<compile_context>
chip_gen: v5e
topology: v5e:2x2
jax: 0.10.0
libtpu: 0.0.40
codegen_flags: <defaults>
</compile_context>

<pallas_src>
import jax
import jax.numpy as jnp
from jax import lax
from jax.experimental import pallas as pl
from jax.experimental.pallas import tpu as pltpu


def _round_up(x: int, m: int) -> int:
    return ((x + m - 1) // m) * m


def _critic_kernel(obs_ref, act_ref, w1o_ref, w1a_ref, b1_ref,
                   w2_ref, b2_ref, w3_ref, b3_ref, out_ref):
    """Fused backbone-MLP + value head for one batch tile.

    obs_ref : [TB, obs_dim]      act_ref : [TB, act_dim]
    w1o     : [obs_dim, hidden]  w1a     : [act_dim, hidden]   b1 : [1, hidden]
    w2      : [hidden, latent]                                 b2 : [1, latent]
    w3      : [1, latent]   (PyTorch last.weight layout)       b3 : [1, 1]
    out     : [1, TB]       (lane-dense values for this tile)
    """
    # First Linear, split over the (obs | actions) concatenation.
    h1 = (jnp.dot(obs_ref[...], w1o_ref[...], preferred_element_type=jnp.float32)
          + jnp.dot(act_ref[...], w1a_ref[...], preferred_element_type=jnp.float32)
          + b1_ref[...])
    h1 = jnp.maximum(h1, 0.0)

    # Second Linear + ReLU.
    h2 = jnp.dot(h1, w2_ref[...], preferred_element_type=jnp.float32) + b2_ref[...]
    h2 = jnp.maximum(h2, 0.0)

    # Value head: contract latent with w3 row -> (1, TB), written lane-dense.
    v = lax.dot_general(w3_ref[...], h2,
                        dimension_numbers=(((1,), (1,)), ((), ())),
                        preferred_element_type=jnp.float32)        # [1, TB]
    out_ref[...] = (v + b3_ref[...]).astype(out_ref.dtype)


def critic_forward(obs, actions, params):
    """obs: [B, obs_dim]; actions: [B, ...] (flattened over dim 1, like torch.flatten(1))."""
    B = obs.shape[0]
    actions_flat = actions.reshape(B, -1)
    obs_dim = obs.shape[1]
    act_dim = actions_flat.shape[1]

    w1_obs, w1_act = params["w1_obs"], params["w1_act"]
    b1, w2, b2 = params["b1"], params["w2"], params["b2"]
    w3, b3 = params["w3"], params["b3"]
    hidden = w1_obs.shape[1]
    latent = w2.shape[1]

    # Batch tile: multiple of 8 sublanes; 128 (lane-dense output) once the batch is big enough.
    TB = 128 if B >= 128 else _round_up(B, 8)
    B_pad = _round_up(B, TB)
    nt = B_pad // TB
    if B_pad != B:
        pad = B_pad - B
        obs = jnp.pad(obs, ((0, pad), (0, 0)))
        actions_flat = jnp.pad(actions_flat, ((0, pad), (0, 0)))

    flops = 2 * B_pad * (obs_dim * hidden + act_dim * hidden + hidden * latent + latent)
    bytes_accessed = 4 * (
        B_pad * (obs_dim + act_dim)                                  # inputs
        + obs_dim * hidden + act_dim * hidden + hidden               # layer 1 params
        + hidden * latent + latent                                   # layer 2 params
        + latent + 1                                                 # value head params
        + B_pad                                                      # output
    )

    out = pl.pallas_call(
        _critic_kernel,
        out_shape=jax.ShapeDtypeStruct((nt, TB), jnp.float32),
        grid=(nt,),
        in_specs=[
            pl.BlockSpec((TB, obs_dim), lambda i: (i, 0)),
            pl.BlockSpec((TB, act_dim), lambda i: (i, 0)),
            pl.BlockSpec((obs_dim, hidden), lambda i: (0, 0)),
            pl.BlockSpec((act_dim, hidden), lambda i: (0, 0)),
            pl.BlockSpec((1, hidden), lambda i: (0, 0)),
            pl.BlockSpec((hidden, latent), lambda i: (0, 0)),
            pl.BlockSpec((1, latent), lambda i: (0, 0)),
            pl.BlockSpec((1, latent), lambda i: (0, 0)),
            pl.BlockSpec((1, 1), lambda i: (0, 0)),
        ],
        out_specs=pl.BlockSpec((1, TB), lambda i: (i, 0)),
        compiler_params=pltpu.CompilerParams(
            dimension_semantics=("parallel",)),
        cost_estimate=pl.CostEstimate(
            flops=flops, transcendentals=0, bytes_accessed=bytes_accessed),
    )(obs, actions_flat, w1_obs, w1_act, b1, w2, b2, w3, b3)

    # Lane-dense (nt, TB) slab -> (B, 1); pure layout plumbing.
    return out.reshape(B_pad, 1)[:B]


def init_params(key, obs_dim, act_dim, hidden_dim, latent_dim):
    """Deterministic synthetic parameters.

    First-layer weight is stored pre-split (obs part / action part), each as [in, out];
    the value-head weight keeps the PyTorch nn.Linear layout [1, latent]."""
    k1, k1b, k2, k3, k4, k5, k6 = jax.random.split(key, 7)
    scale = 0.1
    return {
        "w1_obs": scale * jax.random.normal(k1, (obs_dim, hidden_dim), jnp.float32),
        "w1_act": scale * jax.random.normal(k1b, (act_dim, hidden_dim), jnp.float32),
        "b1": scale * jax.random.normal(k2, (1, hidden_dim), jnp.float32),
        "w2": scale * jax.random.normal(k3, (hidden_dim, latent_dim), jnp.float32),
        "b2": scale * jax.random.normal(k4, (1, latent_dim), jnp.float32),
        "w3": scale * jax.random.normal(k5, (1, latent_dim), jnp.float32),
        "b3": scale * jax.random.normal(k6, (1, 1), jnp.float32),
    }


def _reference_forward(obs, actions, params):
    """Pure-JAX reference matching the PyTorch semantics (explicit concat)."""
    B = obs.shape[0]
    x = jnp.concatenate([obs, actions.reshape(B, -1)], axis=1)
    w1 = jnp.concatenate([params["w1_obs"], params["w1_act"]], axis=0)
    h1 = jnp.maximum(x @ w1 + params["b1"], 0.0)
    h2 = jnp.maximum(h1 @ params["w2"] + params["b2"], 0.0)
    return h2 @ params["w3"].T + params["b3"]


if __name__ == "__main__":
    key = jax.random.PRNGKey(0)
    k_obs, k_act, k_par = jax.random.split(key, 3)

    # Small shapes consistent with the forward pass.
    batch = 8
    obs_dim = 32
    action_shape = (2, 4)          # actions: [B, 2, 4] -> flattened act_dim = 8
    hidden_dim = 64
    latent_dim = 32                # backbone.output_dim
    act_dim = action_shape[0] * action_shape[1]

    obs = jax.random.normal(k_obs, (batch, obs_dim), jnp.float32)
    actions = jax.random.normal(k_act, (batch,) + action_shape, jnp.float32)
    params = init_params(k_par, obs_dim, act_dim, hidden_dim, latent_dim)

    values = critic_forward(obs, actions, params)
    values = jax.block_until_ready(values)

    # Numerical check against the plain-JAX reference.
    ref = _reference_forward(obs, actions, params)
    assert values.shape == (batch, 1), values.shape
    assert jnp.allclose(values, ref, atol=1e-5, rtol=1e-5), "mismatch vs reference"

    print("KERNEL_OK")
</pallas_src>

<mosaic_0001>
module attributes {stable_mosaic.version = 11 : i64} {
  func.func @_critic_kernel(%arg0: i32, %arg1: memref<8x32xf32, #tpu.memory_space<vmem>>, %arg2: memref<8x8xf32, #tpu.memory_space<vmem>>, %arg3: memref<32x64xf32, #tpu.memory_space<vmem>>, %arg4: memref<8x64xf32, #tpu.memory_space<vmem>>, %arg5: memref<1x64xf32, #tpu.memory_space<vmem>>, %arg6: memref<64x32xf32, #tpu.memory_space<vmem>>, %arg7: memref<1x32xf32, #tpu.memory_space<vmem>>, %arg8: memref<1x32xf32, #tpu.memory_space<vmem>>, %arg9: memref<1x1xf32, #tpu.memory_space<vmem>>, %arg10: memref<1x8xf32, #tpu.memory_space<vmem>>) attributes {dimension_semantics = [#tpu.dimension_semantics<parallel>], iteration_bounds = array<i64: 1>, scalar_prefetch = 0 : i64, scratch_operands = 0 : i64, tpu.core_type = #tpu.core_type<tc>, window_params = [{transform_indices = @transform_0, window_bounds = array<i64: 8, 32>}, {transform_indices = @transform_1, window_bounds = array<i64: 8, 8>}, {pipeline_mode = #tpu.pipeline_mode<synchronous>, transform_indices = @transform_2, window_bounds = array<i64: 32, 64>}, {pipeline_mode = #tpu.pipeline_mode<synchronous>, transform_indices = @transform_3, window_bounds = array<i64: 8, 64>}, {pipeline_mode = #tpu.pipeline_mode<synchronous>, transform_indices = @transform_4, window_bounds = array<i64: 1, 64>}, {pipeline_mode = #tpu.pipeline_mode<synchronous>, transform_indices = @transform_5, window_bounds = array<i64: 64, 32>}, {pipeline_mode = #tpu.pipeline_mode<synchronous>, transform_indices = @transform_6, window_bounds = array<i64: 1, 32>}, {pipeline_mode = #tpu.pipeline_mode<synchronous>, transform_indices = @transform_7, window_bounds = array<i64: 1, 32>}, {pipeline_mode = #tpu.pipeline_mode<synchronous>, transform_indices = @transform_8, window_bounds = array<i64: 1, 1>}, {transform_indices = @transform_9, window_bounds = array<i64: 1, 8>}]} {
    %c0 = arith.constant 0 : index
    %c0_0 = arith.constant 0 : index
    %0 = vector.load %arg1[%c0, %c0_0] : memref<8x32xf32, #tpu.memory_space<vmem>>, vector<8x32xf32>
    %c0_1 = arith.constant 0 : index
    %c0_2 = arith.constant 0 : index
    %1 = vector.load %arg3[%c0_1, %c0_2] : memref<32x64xf32, #tpu.memory_space<vmem>>, vector<32x64xf32>
    %cst = arith.constant dense<0.000000e+00> : vector<8x64xf32>
    %2 = tpu.matmul %0, %1, %cst {dimension_numbers = #tpu.dot_dimension_numbers<[1], [0], [0], [1], [0, 0, 1, 1], [], []>} : vector<8x32xf32>, vector<32x64xf32>, vector<8x64xf32> -> vector<8x64xf32>
    %c0_3 = arith.constant 0 : index
    %c0_4 = arith.constant 0 : index
    %3 = vector.load %arg2[%c0_3, %c0_4] : memref<8x8xf32, #tpu.memory_space<vmem>>, vector<8x8xf32>
    %c0_5 = arith.constant 0 : index
    %c0_6 = arith.constant 0 : index
    %4 = vector.load %arg4[%c0_5, %c0_6] : memref<8x64xf32, #tpu.memory_space<vmem>>, vector<8x64xf32>
    %cst_7 = arith.constant dense<0.000000e+00> : vector<8x64xf32>
    %5 = tpu.matmul %3, %4, %cst_7 {dimension_numbers = #tpu.dot_dimension_numbers<[1], [0], [0], [1], [0, 0, 1, 1], [], []>} : vector<8x8xf32>, vector<8x64xf32>, vector<8x64xf32> -> vector<8x64xf32>
    %6 = arith.addf %2, %5 : vector<8x64xf32>
    %c0_8 = arith.constant 0 : index
    %c0_9 = arith.constant 0 : index
    %7 = vector.load %arg5[%c0_8, %c0_9] : memref<1x64xf32, #tpu.memory_space<vmem>>, vector<1x64xf32>
    %8 = vector.broadcast %7 : vector<1x64xf32> to vector<8x64xf32>
    %9 = arith.addf %6, %8 : vector<8x64xf32>
    %cst_10 = arith.constant 0.000000e+00 : f32
    %10 = vector.broadcast %cst_10 : f32 to vector<8x64xf32>
    %11 = arith.maximumf %9, %10 : vector<8x64xf32>
    %c0_11 = arith.constant 0 : index
    %c0_12 = arith.constant 0 : index
    %12 = vector.load %arg6[%c0_11, %c0_12] : memref<64x32xf32, #tpu.memory_space<vmem>>, vector<64x32xf32>
    %cst_13 = arith.constant dense<0.000000e+00> : vector<8x32xf32>
    %13 = tpu.matmul %11, %12, %cst_13 {dimension_numbers = #tpu.dot_dimension_numbers<[1], [0], [0], [1], [0, 0, 1, 1], [], []>} : vector<8x64xf32>, vector<64x32xf32>, vector<8x32xf32> -> vector<8x32xf32>
    %c0_14 = arith.constant 0 : index
    %c0_15 = arith.constant 0 : index
    %14 = vector.load %arg7[%c0_14, %c0_15] : memref<1x32xf32, #tpu.memory_space<vmem>>, vector<1x32xf32>
    %15 = vector.broadcast %14 : vector<1x32xf32> to vector<8x32xf32>
    %16 = arith.addf %13, %15 : vector<8x32xf32>
    %cst_16 = arith.constant 0.000000e+00 : f32
    %17 = vector.broadcast %cst_16 : f32 to vector<8x32xf32>
    %18 = arith.maximumf %16, %17 : vector<8x32xf32>
    %c0_17 = arith.constant 0 : index
    %c0_18 = arith.constant 0 : index
    %19 = vector.load %arg8[%c0_17, %c0_18] : memref<1x32xf32, #tpu.memory_space<vmem>>, vector<1x32xf32>
    %cst_19 = arith.constant dense<0.000000e+00> : vector<1x8xf32>
    %20 = tpu.matmul %19, %18, %cst_19 {dimension_numbers = #tpu.dot_dimension_numbers<[1], [1], [0], [0], [0, 0, 1, 0], [], []>} : vector<1x32xf32>, vector<8x32xf32>, vector<1x8xf32> -> vector<1x8xf32>
    %c0_20 = arith.constant 0 : index
    %c0_21 = arith.constant 0 : index
    %21 = vector.load %arg9[%c0_20, %c0_21] : memref<1x1xf32, #tpu.memory_space<vmem>>, vector<1x1xf32>
    %22 = vector.broadcast %21 : vector<1x1xf32> to vector<1x8xf32>
    %23 = arith.addf %20, %22 : vector<1x8xf32>
    %c0_22 = arith.constant 0 : index
    %c0_23 = arith.constant 0 : index
    %24 = vector.load %arg10[%c0_22, %c0_23] : memref<1x8xf32, #tpu.memory_space<vmem>>, vector<1x8xf32>
    tpu.vector_store %arg10[%c0_22, %c0_23], %23 {strides = array<i32>} : memref<1x8xf32, #tpu.memory_space<vmem>>, vector<1x8xf32>,
    return
  }
  func.func @transform_0(%arg0: i32) -> (i32, i32) {
    %c0_i32 = arith.constant 0 : i32
    %c0_i32_0 = arith.constant 0 : i32
    return %arg0, %c0_i32 : i32, i32
  }
  func.func @transform_1(%arg0: i32) -> (i32, i32) {
    %c0_i32 = arith.constant 0 : i32
    %c0_i32_0 = arith.constant 0 : i32
    return %arg0, %c0_i32 : i32, i32
  }
  func.func @transform_2(%arg0: i32) -> (i32, i32) {
    %c0_i32 = arith.constant 0 : i32
    %c0_i32_0 = arith.constant 0 : i32
    %c0_i32_1 = arith.constant 0 : i32
    return %c0_i32, %c0_i32_0 : i32, i32
  }
  func.func @transform_3(%arg0: i32) -> (i32, i32) {
    %c0_i32 = arith.constant 0 : i32
    %c0_i32_0 = arith.constant 0 : i32
    %c0_i32_1 = arith.constant 0 : i32
    return %c0_i32, %c0_i32_0 : i32, i32
  }
  func.func @transform_4(%arg0: i32) -> (i32, i32) {
    %c0_i32 = arith.constant 0 : i32
    %c0_i32_0 = arith.constant 0 : i32
    %c0_i32_1 = arith.constant 0 : i32
    return %c0_i32, %c0_i32_0 : i32, i32
  }
  func.func @transform_5(%arg0: i32) -> (i32, i32) {
    %c0_i32 = arith.constant 0 : i32
    %c0_i32_0 = arith.constant 0 : i32
    %c0_i32_1 = arith.constant 0 : i32
    return %c0_i32, %c0_i32_0 : i32, i32
  }
  func.func @transform_6(%arg0: i32) -> (i32, i32) {
    %c0_i32 = arith.constant 0 : i32
    %c0_i32_0 = arith.constant 0 : i32
    %c0_i32_1 = arith.constant 0 : i32
    return %c0_i32, %c0_i32_0 : i32, i32
  }
  func.func @transform_7(%arg0: i32) -> (i32, i32) {
    %c0_i32 = arith.constant 0 : i32
    %c0_i32_0 = arith.constant 0 : i32
    %c0_i32_1 = arith.constant 0 : i32
    return %c0_i32, %c0_i32_0 : i32, i32
  }
  func.func @transform_8(%arg0: i32) -> (i32, i32) {
    %c0_i32 = arith.constant 0 : i32
    %c0_i32_0 = arith.constant 0 : i32
    %c0_i32_1 = arith.constant 0 : i32
    return %c0_i32, %c0_i32_0 : i32, i32
  }
  func.func @transform_9(%arg0: i32) -> (i32, i32) {
    %c0_i32 = arith.constant 0 : i32
    %c0_i32_0 = arith.constant 0 : i32
    return %arg0, %c0_i32 : i32, i32
  }
}

</mosaic_0001>

<bundles_post_ra>
// kernel: tpu_custom_call.1
= control target key start
LH: loop header
LB: loop body
LE: loop exit
PB: predicated region body
PF: predicated region fallthrough
CT: control target
= control target key end

     0   :  { %s336_s0 = inlined_call_operand.vmem [shape: f32[8,32], index: 0, kind: input, shape index: {}]   ;;  %s337_s1 = inlined_call_operand.vmem [shape: f32[8,8], index: 1, kind: input, shape index: {}]   ;;  %s338_s2 = inlined_call_operand.vmem [shape: f32[32,64], index: 2, kind: input, shape index: {}]   ;;  %s339_s3 = inlined_call_operand.vmem [shape: f32[8,64], index: 3, kind: input, shape index: {}]   ;;  %s340_s4 = inlined_call_operand.vmem [shape: f32[1,64], index: 4, kind: input, shape index: {}]   ;;  %s341_s5 = inlined_call_operand.vmem [shape: f32[64,32], index: 5, kind: input, shape index: {}]   ;;  %s342_s6 = inlined_call_operand.vmem [shape: f32[1,32], index: 6, kind: input, shape index: {}]   ;;  %s343_s7 = inlined_call_operand.vmem [shape: f32[1,32], index: 7, kind: input, shape index: {}]   ;;  %s344_s8 = inlined_call_operand.<no memory space> [shape: f32[1,1], index: 8, kind: input, shape index: {}]   ;;  %s345_s9 = inlined_call_operand.hbm [shape: f32[1,8], index: 9, kind: output, shape index: {}]  }
   0x1   :  { %v14_v0 = vstv %s344_s8 }
   0x2   :  { %15 = vst [vmem:[#allocation2] sm:$0x1] %v14_v0 }
   0x3   :  { %v39_v1 = vld [vmem:[%s338_s2 + $0x18] sm:$0xff]  ;;  %v38_v2 = vld [vmem:[%s338_s2 + $0x10] sm:$0xff]  ;;  %vm42_vm0 = vcmask 64512   ;;  %v41_v3 = vld [vmem:[%s339_s3] sm:$0xff] }
   0x4   :  { %82 = vmatpush.msra.mxu1 %v39_v1  ;;  %v40_v4 = vld [vmem:[%s337_s1] sm:$0xff]  ;;  %v37_v5 = vld [vmem:[%s338_s2 + $0x8] sm:$0xff]  ;;  %61 = vmatpush.msra.mxu0 %v41_v3  ;;  %v103_v6 = vld [vmem:[%s341_s5 + $0x38] sm:$0xff] }
   0x5   :  { %185 = vmatmul.msk.f32.vlgmr.msra.gmra.mxu0 %vm42_vm0, %v40_v4  ;;  %v102_v7 = vld [vmem:[%s341_s5 + $0x30] sm:$0xff]  ;;  %v36_v8 = vld [vmem:[%s338_s2] sm:$0xff]  ;;  %120 = vmatpush.msra.mxu2 %v103_v6 }
   0x6   :  { %83 = vmatpush.msra.mxu1 %v38_v2 }
   0x7   :  { %16 = vsyncpa [#allocation4], 0  ;;  %v35_v9 = vld [vmem:[%s336_s0] sm:$0xff]  ;;  %vm66_vm1 = vcmask 261120   ;;  %v101_v10 = vld [vmem:[%s341_s5 + $0x28] sm:$0xff]  ;;  %121 = vmatpush.msra.mxu2 %v102_v7  ;;  %vm108_vm2 = vcmask 523264  }
   0x8   :  { %84 = vmatpush.msra.mxu1 %v37_v5  ;;  %v100_v11 = vld [vmem:[%s341_s5 + $0x20] sm:$0xff]  ;;  %v99_v12 = vld [vmem:[%s341_s5 + $0x18] sm:$0xff]  ;;  %v98_v13 = vld [vmem:[%s341_s5 + $0x10] sm:$0xff]  ;;  %v221_v23 = vmov 0   ;;  %s222_s8 = smov [#allocation3]   ;;  %s176_s22 = sshll.u32 %s345_s9, 4  ;;  %s177_s22 = int_to_ptr.hbm [resolvable:$true] %s176_s22 }
   0x9   :  { %122 = vmatpush.msra.mxu2 %v101_v10  ;;  %v97_v14 = vld [vmem:[%s341_s5 + $0x8] sm:$0xff]  ;;  %v96_v15 = vld [vmem:[%s341_s5] sm:$0xff]  ;;  %192 = vset.pattern.permute.xlu0 %v221_v23  ;;  %s174_s19 = sshll.u32 %s222_s8, 4  ;;  %vm167_vm3 = vcmask 57344   ;;  %s175_s19 = int_to_ptr.vmem [resolvable:$true] %s174_s19 }
   0xa   :  { %85 = vmatpush.msra.mxu1 %v36_v8  ;;  %v193_v17 = vld [vmem:[%s340_s4] ss:$0 sm:$0xff] }
   0xb   :  { %186 = vmatmul.msk.f32.vlgmr.msra.gmra.mxu1 %vm66_vm1, %v35_v9  ;;  %123 = vmatpush.msra.mxu2 %v100_v11  ;;  %v134_v22 = vld [vmem:[#allocation2] sm:$0x1] }
   0xc   :  { %137 = vperm.xlu0 %192, %v134_v22   ;;  %v194_v24 = vld [vmem:[%s342_s6] ss:$0 sm:$0xff] }
   0xd   :  { %124 = vmatpush.msra.mxu2 %v99_v12  ;;  %v133_v28 = vld [vmem:[%s343_s7] sm:$0x1] }
   0xf   :  { %125 = vmatpush.msra.mxu2 %v98_v13 }
  0x11   :  { %126 = vmatpush.msra.mxu2 %v97_v14 }
  0x13   :  { %127 = vmatpush.msra.mxu2 %v96_v15 }
  0x7e   :  { %v138_v29 = vpop.permute.xlu0 %137 }
  0x7f   :  { %v140_v30 = vperm.slane %v138_v29, 0 }
  0x82   :  { %v63_v16 = vpop.f32.mrf.mxu0 }
  0x88   :  { %v87_v18 = vpop.f32.mrf.mxu1 }
  0x89   :  { %v88_v19 = vadd.f32 %v87_v18, %v63_v16 }
  0x8b   :  { %v94_v20 = vadd.f32 %v193_v17, %v88_v19 }
  0x8d   :  { %v95_v21 = vmax.f32 %v94_v20, 0.0 }
  0x8f   :  { %187 = vmatmul.msk.f32.vlgmr.msra.gmra.mxu2 %vm108_vm2, %v95_v21 }
 0x112   :  { %v129_v25 = vpop.f32.mrf.mxu2 }
 0x113   :  { %v130_v26 = vadd.f32 %v194_v24, %v129_v25 }
 0x115   :  { %v132_v27 = vmax.f32 %v130_v26, 0.0 }
 0x117   :  { %188 = vmatpush.xpose.msk.msra.mxu3 %vm66_vm1, %v132_v27 }
 0x11a   :  { %189 = vmatmul.msk.f32.vlgmr.msra.gmra.mxu3 %vm66_vm1, %v133_v28 }
 0x19d   :  { %v164_v31 = vpop.f32.mrf.mxu3 }
 0x19e   :  { %v165_v32 = vadd.f32 %v164_v31, %v140_v30 }
 0x1a0   :  { %168 = vst.msk [vmem:[#allocation3] sm:$0x1] %vm167_vm3, %v165_v32 }
 0x1a1   :  { %179 = dma.vmem_to_hbm [thread:$0]  %s175_s19, 16, %s177_s22, [#allocation4]  }
 0x1a2   :  { %219 = dma.done.wait [#allocation4], 16  }
 0x1a3   :  { %220 = vsyncadd [#allocation4], 4294967280 }
 0x1a4   :  { %184 = vsyncpa [#allocation4], 1 }

</bundles_post_ra>
